<compile_context>
chip_gen: v7x
topology: tpu7x:2x2x1
jax: 0.10.0
libtpu: 0.0.40
codegen_flags: <defaults>
</compile_context>

<pallas_src>
import functools

import jax
import jax.numpy as jnp
from jax.experimental import pallas as pl
from jax.experimental.pallas import tpu as pltpu

HIDDEN1 = 16
HIDDEN2 = 32
LANES = 128  # packed parameter slab lane width / padded feature width


def _round_up(n, m):
    return ((n + m - 1) // m) * m


def _param_layout(obs_dims):
    """Row offsets (all 8-aligned) of each parameter region inside the packed slab."""
    obs_pad = _round_up(max(obs_dims, 1), 8)
    r_w1 = 0                       # (obs_pad, 128)  lanes [0, H1) used
    r_b1 = r_w1 + obs_pad          # (8, 128)        row 0, lanes [0, H1)
    r_w2 = r_b1 + 8                # (128, 128)      rows [0, H1), lanes [0, H2)
    r_b2 = r_w2 + LANES            # (8, 128)        row 0, lanes [0, H2)
    r_wh = r_b2 + 8                # (128, 128)      rows [0, H2), lanes [0, 2A)
    r_bh = r_wh + LANES            # (8, 128)        row 0, lanes [0, 2A)
    total_rows = r_bh + 8
    return (r_w1, r_b1, r_w2, r_b2, r_wh, r_bh), total_rows, obs_pad


def _pack_params(params, obs_dims):
    """Pack all weights/biases (heads fused) into one (total_rows, 128) f32 slab."""
    offs, total_rows, _ = _param_layout(obs_dims)
    wh = jnp.concatenate([params["wm"], params["ws"]], axis=1)  # (H2, 2*A)
    bh = jnp.concatenate([params["bm"], params["bs"]], axis=1)  # (1, 2*A)

    slab = jnp.zeros((total_rows, LANES), jnp.float32)

    def place(s, a, row):
        return jax.lax.dynamic_update_slice(s, a.astype(jnp.float32), (row, 0))

    slab = place(slab, params["w1"], offs[0])
    slab = place(slab, params["b1"], offs[1])
    slab = place(slab, params["w2"], offs[2])
    slab = place(slab, params["b2"], offs[3])
    slab = place(slab, wh, offs[4])
    slab = place(slab, bh, offs[5])
    return slab, offs, total_rows


def _policy_kernel(x_ref, p_ref, out_ref, *, action_dims, offs, obs_pad):
    r_w1, r_b1, r_w2, r_b2, r_wh, r_bh = offs

    x = x_ref[...]  # (TB, obs_pad) f32 (zero-padded columns beyond obs_dims)

    # Static, 8-row-aligned, full-128-lane slices of the packed parameter slab.
    w1 = p_ref[r_w1:r_w1 + obs_pad, :]   # (obs_pad, 128)
    b1 = p_ref[r_b1:r_b1 + 1, :]         # (1, 128)
    w2 = p_ref[r_w2:r_w2 + LANES, :]     # (128, 128)
    b2 = p_ref[r_b2:r_b2 + 1, :]         # (1, 128)
    wh = p_ref[r_wh:r_wh + LANES, :]     # (128, 128)
    bh = p_ref[r_bh:r_bh + 1, :]         # (1, 128)

    # shared_net: Linear -> Tanh -> Linear -> Tanh (zero-padded lanes stay exactly 0).
    h1 = jnp.tanh(jnp.dot(x, w1, preferred_element_type=jnp.float32) + b1)   # (TB,128)
    h2 = jnp.tanh(jnp.dot(h1, w2, preferred_element_type=jnp.float32) + b2)  # (TB,128)

    # Fused heads: one MXU matmul producing [mean | pre-softplus stddev | zeros].
    heads = jnp.dot(h2, wh, preferred_element_type=jnp.float32) + bh         # (TB,128)

    # Numerically-stable softplus applied to the stddev half via lane mask.
    sp = jnp.maximum(heads, 0.0) + jnp.log1p(jnp.exp(-jnp.abs(heads)))
    col = jax.lax.broadcasted_iota(jnp.int32, heads.shape, dimension=1)
    out_ref[...] = jnp.where(col < action_dims, heads, sp)  # full-lane dense store


def _pick_batch_tile(B):
    """Largest power-of-two tile (>=8) dividing B, preferring grid >= 2 (v7x megacore)."""
    cands = (4096, 2048, 1024, 512, 256, 128, 64, 32, 16, 8)
    for cand in cands:
        if B % cand == 0 and B // cand >= 2:
            return cand
    for cand in cands:
        if B % cand == 0:
            return cand
    return B  # no usable divisor: whole batch, grid = 1


def policy_network_forward(x, params):
    """x: (B, obs_dims). Returns (action_means, action_stddevs), each (B, A)."""
    B, obs_dims = x.shape
    action_dims = params["wm"].shape[1]
    assert 2 * action_dims <= LANES, "fused head must fit in 128 lanes"
    assert HIDDEN1 <= LANES and HIDDEN2 <= LANES

    x = x.astype(jnp.float32)  # matches PyTorch's x.float()

    slab, offs, total_rows = _pack_params(params, obs_dims)
    _, _, obs_pad = _param_layout(obs_dims)
    if obs_pad != obs_dims:
        x = jnp.pad(x, ((0, 0), (0, obs_pad - obs_dims)))  # zero cols: exact

    TB = _pick_batch_tile(B)
    grid = (B // TB,)

    kernel = functools.partial(
        _policy_kernel, action_dims=action_dims, offs=offs, obs_pad=obs_pad
    )

    fused = pl.pallas_call(
        kernel,
        out_shape=jax.ShapeDtypeStruct((B, LANES), jnp.float32),
        grid=grid,
        in_specs=[
            pl.BlockSpec((TB, obs_pad), lambda i: (i, 0)),        # x tile
            pl.BlockSpec((total_rows, LANES), lambda i: (0, 0)),  # packed params (resident)
        ],
        out_specs=pl.BlockSpec((TB, LANES), lambda i: (i, 0)),    # lane-dense output
        compiler_params=pltpu.CompilerParams(
            dimension_semantics=("parallel",),
        ),
    )(x, slab)

    means = fused[:, :action_dims]
    stddevs = fused[:, action_dims:2 * action_dims]
    return means, stddevs


def init_params(key, obs_dims, action_dims):
    """Deterministic init matching the PyTorch module's layer shapes.

    PyTorch Linear stores weight (out, in); here we keep (in, out) so the
    kernel computes x @ W + b directly.
    """
    ks = jax.random.split(key, 8)

    def linear(kw, kb, fan_in, fan_out):
        bound = 1.0 / jnp.sqrt(fan_in)
        w = jax.random.uniform(kw, (fan_in, fan_out), jnp.float32, -bound, bound)
        b = jax.random.uniform(kb, (1, fan_out), jnp.float32, -bound, bound)
        return w, b

    w1, b1 = linear(ks[0], ks[1], obs_dims, HIDDEN1)
    w2, b2 = linear(ks[2], ks[3], HIDDEN1, HIDDEN2)
    wm, bm = linear(ks[4], ks[5], HIDDEN2, action_dims)
    ws, bs = linear(ks[6], ks[7], HIDDEN2, action_dims)
    return dict(w1=w1, b1=b1, w2=w2, b2=b2, wm=wm, bm=bm, ws=ws, bs=bs)


def _reference_forward(x, p):
    x = x.astype(jnp.float32)
    h1 = jnp.tanh(x @ p["w1"] + p["b1"])
    h2 = jnp.tanh(h1 @ p["w2"] + p["b2"])
    mean = h2 @ p["wm"] + p["bm"]
    s = h2 @ p["ws"] + p["bs"]
    std = jnp.maximum(s, 0.0) + jnp.log1p(jnp.exp(-jnp.abs(s)))  # stable softplus
    return mean, std


if __name__ == "__main__":
    key = jax.random.PRNGKey(0)
    k_x, k_p, k_x2 = jax.random.split(key, 3)

    batch = 2
    obs_dims = 4
    action_dims = 2

    x = jax.random.normal(k_x, (batch, obs_dims), dtype=jnp.float32)
    params = init_params(k_p, obs_dims, action_dims)

    means, stddevs = policy_network_forward(x, params)
    means = jax.block_until_ready(means)
    stddevs = jax.block_until_ready(stddevs)

    ref_means, ref_stddevs = _reference_forward(x, params)
    assert means.shape == (batch, action_dims)
    assert stddevs.shape == (batch, action_dims)
    assert jnp.allclose(means, ref_means, atol=1e-5, rtol=1e-5)
    assert jnp.allclose(stddevs, ref_stddevs, atol=1e-5, rtol=1e-5)
    assert bool(jnp.all(stddevs > 0.0))

    # Exercise the tiled / multi-block path (grid >= 2) as well.
    x_big = jax.random.normal(k_x2, (256, obs_dims), dtype=jnp.float32)
    m_big, s_big = policy_network_forward(x_big, params)
    m_big = jax.block_until_ready(m_big)
    rm_big, rs_big = _reference_forward(x_big, params)
    assert jnp.allclose(m_big, rm_big, atol=1e-5, rtol=1e-5)
    assert jnp.allclose(s_big, rs_big, atol=1e-5, rtol=1e-5)

    print("KERNEL_OK")
</pallas_src>

<mosaic_0001>
module attributes {stable_mosaic.version = 11 : i64} {
  func.func @_policy_kernel(%arg0: i32, %arg1: memref<2x8xf32, #tpu.memory_space<vmem>>, %arg2: memref<288x128xf32, #tpu.memory_space<vmem>>, %arg3: memref<2x128xf32, #tpu.memory_space<vmem>>) attributes {dimension_semantics = [#tpu.dimension_semantics<parallel>], iteration_bounds = array<i64: 1>, scalar_prefetch = 0 : i64, scratch_operands = 0 : i64, tpu.core_type = #tpu.core_type<tc>, window_params = [{transform_indices = @transform_0, window_bounds = array<i64: 2, 8>}, {pipeline_mode = #tpu.pipeline_mode<synchronous>, transform_indices = @transform_1, window_bounds = array<i64: 288, 128>}, {transform_indices = @transform_2, window_bounds = array<i64: 2, 128>}]} {
    %c0 = arith.constant 0 : index
    %c0_0 = arith.constant 0 : index
    %0 = vector.load %arg1[%c0, %c0_0] : memref<2x8xf32, #tpu.memory_space<vmem>>, vector<2x8xf32>
    %c0_1 = arith.constant 0 : index
    %c0_2 = arith.constant 0 : index
    %1 = vector.load %arg2[%c0_1, %c0_2] : memref<288x128xf32, #tpu.memory_space<vmem>>, vector<8x128xf32>
    %c8 = arith.constant 8 : index
    %c0_3 = arith.constant 0 : index
    %2 = vector.load %arg2[%c8, %c0_3] : memref<288x128xf32, #tpu.memory_space<vmem>>, vector<1x128xf32>
    %c16 = arith.constant 16 : index
    %c0_4 = arith.constant 0 : index
    %3 = vector.load %arg2[%c16, %c0_4] : memref<288x128xf32, #tpu.memory_space<vmem>>, vector<128x128xf32>
    %c144 = arith.constant 144 : index
    %c0_5 = arith.constant 0 : index
    %4 = vector.load %arg2[%c144, %c0_5] : memref<288x128xf32, #tpu.memory_space<vmem>>, vector<1x128xf32>
    %c152 = arith.constant 152 : index
    %c0_6 = arith.constant 0 : index
    %5 = vector.load %arg2[%c152, %c0_6] : memref<288x128xf32, #tpu.memory_space<vmem>>, vector<128x128xf32>
    %c280 = arith.constant 280 : index
    %c0_7 = arith.constant 0 : index
    %6 = vector.load %arg2[%c280, %c0_7] : memref<288x128xf32, #tpu.memory_space<vmem>>, vector<1x128xf32>
    %cst = arith.constant dense<0.000000e+00> : vector<2x128xf32>
    %7 = tpu.matmul %0, %1, %cst {dimension_numbers = #tpu.dot_dimension_numbers<[1], [0], [0], [1], [0, 0, 1, 1], [], []>} : vector<2x8xf32>, vector<8x128xf32>, vector<2x128xf32> -> vector<2x128xf32>
    %8 = vector.broadcast %2 : vector<1x128xf32> to vector<2x128xf32>
    %9 = arith.addf %7, %8 : vector<2x128xf32>
    %10 = math.tanh %9 : vector<2x128xf32>
    %cst_8 = arith.constant dense<0.000000e+00> : vector<2x128xf32>
    %11 = tpu.matmul %10, %3, %cst_8 {dimension_numbers = #tpu.dot_dimension_numbers<[1], [0], [0], [1], [0, 0, 1, 1], [], []>} : vector<2x128xf32>, vector<128x128xf32>, vector<2x128xf32> -> vector<2x128xf32>
    %12 = vector.broadcast %4 : vector<1x128xf32> to vector<2x128xf32>
    %13 = arith.addf %11, %12 : vector<2x128xf32>
    %14 = math.tanh %13 : vector<2x128xf32>
    %cst_9 = arith.constant dense<0.000000e+00> : vector<2x128xf32>
    %15 = tpu.matmul %14, %5, %cst_9 {dimension_numbers = #tpu.dot_dimension_numbers<[1], [0], [0], [1], [0, 0, 1, 1], [], []>} : vector<2x128xf32>, vector<128x128xf32>, vector<2x128xf32> -> vector<2x128xf32>
    %16 = vector.broadcast %6 : vector<1x128xf32> to vector<2x128xf32>
    %17 = arith.addf %15, %16 : vector<2x128xf32>
    %cst_10 = arith.constant 0.000000e+00 : f32
    %18 = vector.broadcast %cst_10 : f32 to vector<2x128xf32>
    %19 = arith.maximumf %17, %18 : vector<2x128xf32>
    %20 = math.absf %17 : vector<2x128xf32>
    %cst_11 = arith.constant 0.000000e+00 : f32
    %21 = vector.broadcast %cst_11 : f32 to vector<2x128xf32>
    %22 = arith.subf %21, %20 : vector<2x128xf32>
    %23 = math.exp %22 : vector<2x128xf32>
    %24 = math.log1p %23 : vector<2x128xf32>
    %25 = arith.addf %19, %24 : vector<2x128xf32>
    %26 = tpu.iota {dimensions = array<i32: 1>} : vector<2x128xi32>
    %c2_i32 = arith.constant 2 : i32
    %27 = vector.broadcast %c2_i32 : i32 to vector<2x128xi32>
    %28 = arith.cmpi slt, %26, %27 : vector<2x128xi32>
    %29 = arith.select %28, %17, %25 : vector<2x128xi1>, vector<2x128xf32>
    %c0_12 = arith.constant 0 : index
    %c0_13 = arith.constant 0 : index
    %30 = vector.load %arg3[%c0_12, %c0_13] : memref<2x128xf32, #tpu.memory_space<vmem>>, vector<2x128xf32>
    tpu.vector_store %arg3[%c0_12, %c0_13], %29 {strides = array<i32>} : memref<2x128xf32, #tpu.memory_space<vmem>>, vector<2x128xf32>,
    return
  }
  func.func @transform_0(%arg0: i32) -> (i32, i32) {
    %c0_i32 = arith.constant 0 : i32
    %c0_i32_0 = arith.constant 0 : i32
    return %arg0, %c0_i32 : i32, i32
  }
  func.func @transform_1(%arg0: i32) -> (i32, i32) {
    %c0_i32 = arith.constant 0 : i32
    %c0_i32_0 = arith.constant 0 : i32
    %c0_i32_1 = arith.constant 0 : i32
    return %c0_i32, %c0_i32_0 : i32, i32
  }
  func.func @transform_2(%arg0: i32) -> (i32, i32) {
    %c0_i32 = arith.constant 0 : i32
    %c0_i32_0 = arith.constant 0 : i32
    return %arg0, %c0_i32 : i32, i32
  }
}

</mosaic_0001>

<bundles_post_ra>
// kernel: tpu_custom_call.1
= control target key start
LH: loop header
LB: loop body
LE: loop exit
PB: predicated region body
PF: predicated region fallthrough
CT: control target
= control target key end

     0   :  { %7 = vsyncpa [#allocation3], 0  ;;  %s675_s0 = inlined_call_operand.hbm [shape: f32[2,8], index: 0, kind: input, shape index: {}]   ;;  %s676_s1 = inlined_call_operand.hbm [shape: f32[288,128], index: 1, kind: input, shape index: {}]   ;;  %s677_s2 = inlined_call_operand.hbm [shape: f32[2,128], index: 2, kind: output, shape index: {}]  }
   0x1   :  { %8 = vsyncpa [#allocation6], 0 }
   0x2   :  { %9 = vsyncpa [#allocation4], 0  ;;  %s590_s9 = smov [#allocation2]   ;;  %s591_s11 = smov [#allocation5]  }
   0x3   :  { %s16_s10 = sshll.u32 %s590_s9, 4  ;;  %s25_s12 = sshll.u32 %s591_s11, 4  ;;  %s17_s10 = int_to_ptr.vmem [resolvable:$true] %s16_s10  ;;  %s613_s12 = int_to_ptr.vmem [resolvable:$true] %s25_s12 }
   0x4   :  { %s518_s15 = scalar_lea.hbm %s675_s0, 32 }
   0x5   :  { %p519_p0 = scmp.ne.s32.totalorder %s675_s0, %s518_s15  ;;  %p522_p1 = scmp.lt.u32.totalorder %s518_s15, %s675_s0 }
   0x7   :  { %p524_p2 = pnand %p522_p1, %p519_p0 }
   0x9   :  { %527 = shalt.err (!%p524_p2)
}
   0xa   :  { %s528_s20 = scalar_lea.vmem %s17_s10, 32  ;;  %p533_p4 = scmp.lt.s32.totalorder %s17_s10, %s17_s10 }
   0xb   :  { %p529_p3 = scmp.ne.s32.totalorder %s17_s10, %s528_s20  ;;  %p534_p5 = scmp.lt.s32.totalorder %s528_s20, %s528_s20 }
   0xd   :  { %p535_p6 = por %p534_p5, %p533_p4 }
   0xf   :  { %p536_p7 = pnand %p535_p6, %p529_p3 }
  0x11   :  { %539 = shalt.err (!%p536_p7)
}
  0x12   :  { %19 = dma.hbm_to_vmem [thread:$0]  %s675_s0, 32, %s17_s10, [#allocation3]  }
  0x13   :  { %s540_s25 = scalar_lea.hbm %s676_s1, 4608 }
  0x14   :  { %p541_p8 = scmp.ne.s32.totalorder %s676_s1, %s540_s25  ;;  %p544_p9 = scmp.lt.u32.totalorder %s540_s25, %s676_s1 }
  0x16   :  { %p546_p10 = pnand %p544_p9, %p541_p8 }
  0x18   :  { %549 = shalt.err (!%p546_p10)
}
  0x19   :  { %s550_s30 = scalar_lea.vmem %s613_s12, 4608  ;;  %p555_p12 = scmp.lt.s32.totalorder %s613_s12, %s613_s12 }
  0x1a   :  { %p551_p11 = scmp.ne.s32.totalorder %s613_s12, %s550_s30  ;;  %p556_p13 = scmp.lt.s32.totalorder %s550_s30, %s550_s30 }
  0x1c   :  { %p557_p0 = por %p556_p13, %p555_p12 }
  0x1e   :  { %p558_p1 = pnand %p557_p0, %p551_p11 }
  0x20   :  { %561 = shalt.err (!%p558_p1)
}
  0x21   :  { %s592_s0 = smov 128   ;;  %s593_s3 = smov 8  }
  0x22   :  { %31 = dma.hbm_to_vmem [thread:$0]  %s676_s1, 4608, %s613_s12, [#allocation6], %s592_s0, %s592_s0, %s593_s3  }
  0x23   :  { %584 = dma.done.wait [#allocation3], 32  }
  0x24   :  { %585 = vsyncadd [#allocation3], 4294967264 }
  0x25   :  { %586 = dma.done.wait [#allocation6], 4608  }
  0x26   :  { %587 = vsyncadd [#allocation6], 4294962688  ;;  %v594_v0 = vmov 0.0   ;;  %vm595_vm0 = vmmov 0   ;;  %v596_v1 = vmov 0.0|0.0   ;;  %vm79_vm1 = vcmask 64512  }
  0x27   :  { %379 = vmatprep.subr.mxu0 %v594_v0  ;;  %381 = vmatprep.mubr.msk.f32.mxu0 %vm595_vm0, %v594_v0  ;;  %v39_v2 = vld [vmem:[#allocation5] sm:$0xff]  ;;  %v38_v3 = vld [vmem:[#allocation2] sm:$0x3]  ;;  %v41_v4 = vld [vmem:[#allocation5 + $0x10] sm:$0xff]  ;;  %s597_s1 = smov [#allocation7]  }
  0x28   :  { %454 = vmatprep.subr.bf16.mxu1 %v596_v1  ;;  %416 = vmatprep.mubr.msk.f32.mxu1 %vm595_vm0, %v594_v0  ;;  %v42_v5 = vld [vmem:[#allocation5 + $0x18] sm:$0xff]  ;;  %v43_v6 = vld [vmem:[#allocation5 + $0x20] sm:$0xff]  ;;  %v44_v7 = vld [vmem:[#allocation5 + $0x28] sm:$0xff]  ;;  %s329_s6 = sshll.u32 %s597_s1, 4  ;;  %s330_s6 = int_to_ptr.vmem [resolvable:$true] %s329_s6 }
  0x29   :  { %380 = vmatpush3.msra.mxu0 %v39_v2  ;;  %v455_v8 = vpack.c.bf16 %v42_v5, %v41_v4  ;;  %v458_v9 = vpack.c.bf16 %v44_v7, %v43_v6  ;;  %v45_v10 = vld [vmem:[#allocation5 + $0x30] sm:$0xff]  ;;  %v46_v11 = vld [vmem:[#allocation5 + $0x38] sm:$0xff]  ;;  %v47_v13 = vld [vmem:[#allocation5 + $0x40] sm:$0xff]  ;;  %s562_s7 = scalar_lea.vmem %s330_s6, 32  ;;  %p567_p3 = scmp.lt.s32.totalorder %s330_s6, %s330_s6 }
  0x2a   :  { %382 = vmatmul.mubr.msk.f32.vlgmr.msra.gmra.mrb[0].mxu0 %vm79_vm1, %v38_v3  ;;  %478 = vmatprep.subr.bf16.mxu0 %v596_v1  ;;  %v461_v12 = vpack.c.bf16 %v46_v11, %v45_v10  ;;  %v48_v14 = vld [vmem:[#allocation5 + $0x48] sm:$0xff]  ;;  %v49_v16 = vld [vmem:[#allocation5 + $0x50] sm:$0xff]  ;;  %v50_v17 = vld [vmem:[#allocation5 + $0x58] sm:$0xff]  ;;  %p563_p2 = scmp.ne.s32.totalorder %s330_s6, %s562_s7  ;;  %p568_p4 = scmp.lt.s32.totalorder %s562_s7, %s562_s7 }
  0x2b   :  { %451 = vmatprep.mubr.msk.f32.mxu0 %vm595_vm0, %v594_v0  ;;  %456 = vmatpush3.bf16.msra.mxu1 %v455_v8  ;;  %v464_v15 = vpack.c.bf16 %v48_v14, %v47_v13  ;;  %v467_v18 = vpack.c.bf16 %v50_v17, %v49_v16  ;;  %v51_v19 = vld [vmem:[#allocation5 + $0x60] sm:$0xff]  ;;  %v52_v20 = vld [vmem:[#allocation5 + $0x68] sm:$0xff]  ;;  %v53_v22 = vld [vmem:[#allocation5 + $0x70] sm:$0xff]  ;;  %v318_v8 = vlaneseq }
  0x2c   :  { %457 = vmatprep.subr.bf16.mxu1 %v596_v1  ;;  %v470_v21 = vpack.c.bf16 %v52_v20, %v51_v19  ;;  %v54_v23 = vld [vmem:[#allocation5 + $0x78] sm:$0xff]  ;;  %v55_v25 = vld [vmem:[#allocation5 + $0x80] sm:$0xff]  ;;  %v56_v26 = vld [vmem:[#allocation5 + $0x88] sm:$0xff]  ;;  %p569_p5 = por %p568_p4, %p567_p3 }
  0x2d   :  { %v473_v24 = vpack.c.bf16 %v54_v23, %v53_v22  ;;  %v476_v27 = vpack.c.bf16 %v56_v26, %v55_v25  ;;  %v58_v28 = vld [vmem:[#allocation5 + $0x98] sm:$0xff]  ;;  %v59_v29 = vld [vmem:[#allocation5 + $0xa0] sm:$0xff]  ;;  %v60_v30 = vld [vmem:[#allocation5 + $0xa8] sm:$0xff]  ;;  %v319_v11 = vand.u32 127, %v318_v8 }
  0x2e   :  { %v479_v31 = vpack.c.bf16 %v59_v29, %v58_v28  ;;  %v61_v32 = vld [vmem:[#allocation5 + $0xb0] sm:$0xff]  ;;  %v62_v34 = vld [vmem:[#allocation5 + $0xb8] sm:$0xff]  ;;  %v63_v35 = vld [vmem:[#allocation5 + $0xc0] sm:$0xff]  ;;  %p570_p6 = pnand %p569_p5, %p563_p2 }
  0x2f   :  { %459 = vmatpush3.bf16.msra.mxu1 %v458_v9  ;;  %v482_v33 = vpack.c.bf16 %v61_v32, %v60_v30  ;;  %v485_v36 = vpack.c.bf16 %v63_v35, %v62_v34  ;;  %v64_v37 = vld [vmem:[#allocation5 + $0xc8] sm:$0xff]  ;;  %v65_v38 = vld [vmem:[#allocation5 + $0xd0] sm:$0xff]  ;;  %v66_v40 = vld [vmem:[#allocation5 + $0xd8] sm:$0xff]  ;;  %vm320_vm3 = vcmp.lt.s32.totalorder %v319_v11, 2 }
  0x30   :  { %460 = vmatprep.subr.bf16.mxu1 %v596_v1  ;;  %480 = vmatpush3.bf16.msra.mxu0 %v479_v31  ;;  %v488_v39 = vpack.c.bf16 %v65_v38, %v64_v37  ;;  %v67_v41 = vld [vmem:[#allocation5 + $0xe0] sm:$0xff]  ;;  %v339_v43 = vld [vmem:[#allocation5 + $0x8] ss:$0 sm:$0xff]  ;;  %v69_v49 = vld [vmem:[#allocation5 + $0xf0] sm:$0xff] }
  0x31   :  { %481 = vmatprep.subr.bf16.mxu0 %v596_v1  ;;  %v491_v42 = vpack.c.bf16 %v67_v41, %v66_v40  ;;  %v68_v48 = vld [vmem:[#allocation5 + $0xe8] sm:$0xff]  ;;  %v70_v51 = vld [vmem:[#allocation5 + $0xf8] sm:$0xff]  ;;  %v71_v52 = vld [vmem:[#allocation5 + $0x100] sm:$0xff] }
  0x32   :  { %v494_v50 = vpack.c.bf16 %v69_v49, %v68_v48  ;;  %v497_v53 = vpack.c.bf16 %v71_v52, %v70_v51  ;;  %v72_v54 = vld [vmem:[#allocation5 + $0x108] sm:$0xff]  ;;  %v73_v55 = vld [vmem:[#allocation5 + $0x110] sm:$0xff]  ;;  %v342_v62 = vld [vmem:[#allocation5 + $0x118] ss:$0 sm:$0xff] }
  0x33   :  { %462 = vmatpush3.bf16.msra.mxu1 %v461_v12  ;;  %v500_v56 = vpack.c.bf16 %v73_v55, %v72_v54  ;;  %v341_v57 = vld [vmem:[#allocation5 + $0x90] ss:$0 sm:$0xff] }
  0x34   :  { %463 = vmatprep.subr.bf16.mxu1 %v596_v1  ;;  %483 = vmatpush3.bf16.msra.mxu0 %v482_v33 }
  0x35   :  { %484 = vmatprep.subr.bf16.mxu0 %v596_v1 }
  0x37   :  { %465 = vmatpush3.bf16.msra.mxu1 %v464_v15 }
  0x38   :  { %466 = vmatprep.subr.bf16.mxu1 %v596_v1  ;;  %486 = vmatpush3.bf16.msra.mxu0 %v485_v36 }
  0x39   :  { %487 = vmatprep.subr.bf16.mxu0 %v596_v1 }
  0x3b   :  { %468 = vmatpush3.bf16.msra.mxu1 %v467_v18 }
  0x3c   :  { %469 = vmatprep.subr.bf16.mxu1 %v596_v1  ;;  %489 = vmatpush3.bf16.msra.mxu0 %v488_v39 }
  0x3d   :  { %490 = vmatprep.subr.bf16.mxu0 %v596_v1 }
  0x3f   :  { %471 = vmatpush3.bf16.msra.mxu1 %v470_v21 }
  0x40   :  { %472 = vmatprep.subr.bf16.mxu1 %v596_v1  ;;  %492 = vmatpush3.bf16.msra.mxu0 %v491_v42 }
  0x41   :  { %493 = vmatprep.subr.bf16.mxu0 %v596_v1 }
  0x43   :  { %474 = vmatpush3.bf16.msra.mxu1 %v473_v24 }
  0x44   :  { %475 = vmatprep.subr.bf16.mxu1 %v596_v1  ;;  %495 = vmatpush3.bf16.msra.mxu0 %v494_v50 }
  0x45   :  { %496 = vmatprep.subr.bf16.mxu0 %v596_v1 }
  0x47   :  { %477 = vmatpush3.bf16.msra.mxu1 %v476_v27 }
  0x48   :  { %498 = vmatpush3.bf16.msra.mxu0 %v497_v53 }
  0x49   :  { %499 = vmatprep.subr.bf16.mxu0 %v596_v1 }
  0x4c   :  { %501 = vmatpush3.bf16.msra.mxu0 %v500_v56 }
  0xfd   :  { %v149_v44 = vpop.f32.mrb[0].mxu0 }
  0xfe   :  { %v150_v45 = vadd.f32 %v339_v43, %v149_v44  ;;  %v383_v46 = vpop.f32.mrb[1].mxu0 }
 0x100   :  { %510 = vtanh.f32 %v150_v45 }
 0x10a   :  { %v511_v47 = vpop.eup %510 }
 0x10b   :  { %417 = vmatmul.mubr.f32.vlgmr.msra.gmra.mrb[0].mxu1 %v511_v47 }
 0x1de   :  { %v224_v58 = vpop.f32.mrb[0].mxu1 }
 0x1df   :  { %v225_v59 = vadd.f32 %v341_v57, %v224_v58  ;;  %v418_v60 = vpop.f32.mrb[1].mxu1 }
 0x1e1   :  { %512 = vtanh.f32 %v225_v59 }
 0x1eb   :  { %v513_v61 = vpop.eup %512 }
 0x1ec   :  { %452 = vmatmul.mubr.f32.vlgmr.msra.gmra.mrb[2].mxu0 %v513_v61 }
 0x2bf   :  { %v299_v63 = vpop.f32.mrb[2].mxu0 }
 0x2c0   :  { %v300_v0 = vadd.f32 %v342_v62, %v299_v63  ;;  %v453_v2 = vpop.f32.mrb[3].mxu0 }
 0x2c2   :  { %v304_v3 = vand.u32 2147483647, %v300_v0  ;;  %v303_v15 = vmax.f32 %v300_v0, 0.0 }
 0x2c4   :  { %v305_v4 = vsub.f32 0.0, %v304_v3 }
 0x2c6   :  { %v306_v5 = vmul.f32 1.442695, %v305_v4 }
 0x2c8   :  { %514 = vpow2.f32 %v306_v5 }
 0x2d2   :  { %v515_v6 = vpop.eup %514 }
 0x2d3   :  { %v308_v7 = vadd.f32 1.0, %v515_v6  ;;  %v311_v1 = vmul.f32 -0.5, %v515_v6  ;;  %v314_v10 = vand.u32 2147483647, %v515_v6 }
 0x2d5   :  { %516 = vlog2.f32 %v308_v7  ;;  %v312_v9 = vadd.f32 1.0, %v311_v1  ;;  %vm315_vm2 = vcmp.lt.f32.partialorder %v314_v10, 0.0004427343 }
 0x2d7   :  { %v313_v14 = vmul.f32 %v515_v6, %v312_v9 }
 0x2df   :  { %v517_v12 = vpop.eup %516 }
 0x2e0   :  { %v310_v13 = vmul.f32 0.6931472, %v517_v12 }
 0x2e2   :  { %v316_v16 = vsel %vm315_vm2, %v313_v14, %v310_v13 }
 0x2e3   :  { %v317_v17 = vadd.f32 %v316_v16, %v303_v15 }
 0x2e5   :  { %v321_v18 = vsel %vm320_vm3, %v300_v0, %v317_v17 }
 0x2e6   :  { %322 = vst [vmem:[#allocation7] sm:$0x3] %v321_v18 }
 0x2e7   :  { %573 = shalt.err (!%p570_p6)
}
 0x2e8   :  { %s574_s10 = scalar_lea.hbm %s677_s2, 32 }
 0x2e9   :  { %p575_p7 = scmp.ne.s32.totalorder %s677_s2, %s574_s10  ;;  %p578_p8 = scmp.lt.u32.totalorder %s574_s10, %s677_s2 }
 0x2eb   :  { %p580_p9 = pnand %p578_p8, %p575_p7 }
 0x2ed   :  { %583 = shalt.err (!%p580_p9)
}
 0x2ee   :  { %332 = dma.vmem_to_hbm [thread:$0]  %s330_s6, 32, %s677_s2, [#allocation4]  }
 0x2ef   :  { %588 = dma.done.wait [#allocation4], 32  }
 0x2f0   :  { %589 = vsyncadd [#allocation4], 4294967264 }
 0x2f1   :  { %336 = vsyncpa [#allocation3], 1 }
 0x2f2   :  { %337 = vsyncpa [#allocation6], 1 }
 0x2f3   :  { %338 = vsyncpa [#allocation4], 1 }

</bundles_post_ra>
